<compile_context>
chip_gen: v7x
topology: tpu7x:2x2x1
jax: 0.10.0
libtpu: 0.0.40
codegen_flags: <defaults>
</compile_context>

<pallas_src>
import math
from functools import partial

import jax
import jax.numpy as jnp
from jax.experimental import pallas as pl
from jax.experimental.pallas import tpu as pltpu


# ============================================================================
# Pallas kernel: fused shared-MLP (1x1 conv -> BN(eval, folded) -> ReLU) stack
# + max pooling over the neighbor (nsample=K) axis.
#
# Kernel-block layout:
#   x block   : (Cin, K*tile_m) bf16, columns ordered k-major / m-minor,
#               i.e. col = k*tile_m + m_local  (m_local on lanes, 128-aligned).
#   per layer : h = W @ h  -> (Cout, K*tile_m) f32 accumulate, then bias + ReLU.
#   epilogue  : max over the K contiguous tile_m-wide lane slabs  -> (C_last, tile_m)
#   out block : (C_last, tile_m) f32, lane-dense store.
# ============================================================================
def _make_sa_kernel(n_layers, k, tile_m):
    def kernel(x_ref, *rest):
        out_ref = rest[-1]
        param_refs = rest[:-1]

        h = x_ref[...]                                   # (Cin, K*tile_m) bf16
        for li in range(n_layers):
            w = param_refs[2 * li][...]                  # (Cout, Cprev) bf16, BN scale folded
            bvec = param_refs[2 * li + 1][...]           # (Cout, 1)     f32 folded BN bias
            h = jnp.dot(w, h, preferred_element_type=jnp.float32)
            h = jnp.maximum(h + bvec, 0.0)               # BatchNorm(eval) bias + ReLU
            if li + 1 < n_layers:
                h = h.astype(jnp.bfloat16)               # bf16 feed for the next MXU matmul

        # torch.max over the nsample axis: K-1 elementwise maxima over aligned,
        # contiguous 128-multiple lane slices (no relayout, pure VPU).
        acc = h[:, :tile_m]
        for kk in range(1, k):
            acc = jnp.maximum(acc, h[:, kk * tile_m:(kk + 1) * tile_m])
        out_ref[...] = acc.astype(out_ref.dtype)

    return kernel


def _pick_tile_m(m, k, cin, couts, budget_bytes=12 * 1024 * 1024):
    """Pick a lane-axis tile (multiple of 128) against a VMEM working-set budget."""
    max_c = max(couts) if couts else cin
    c_last = couts[-1] if couts else cin
    # Approx VMEM bytes per center (per M lane):
    #   bf16 x tile, double-buffered : 2 * k * cin * 2
    #   f32 + bf16 layer intermediates: k * max_c * (4 + 2)
    #   f32 output, double-buffered   : 2 * c_last * 4
    per_m = 4 * k * cin + 6 * k * max_c + 8 * c_last
    t = (budget_bytes // max(per_m, 1)) // 128 * 128
    t = int(max(128, min(t, 1024)))
    m_pad_min = -(-m // 128) * 128
    if m_pad_min >= 512:
        # keep >=4 grid steps so v7x's two TensorCores both get pipelined work
        t = min(t, max(128, (m_pad_min // 4) // 128 * 128))
    return min(t, m_pad_min)


def sa_mlp_maxpool(feats_mkc, weights, biases, *, tile_m=None,
                   vmem_limit_bytes=32 * 1024 * 1024):
    """feats_mkc: [M, K, Cin]  ->  [C_last, M] f32 (MLP stack + max over K)."""
    m, k, cin = feats_mkc.shape
    couts = [int(w.shape[0]) for w in weights]
    c_last = couts[-1] if couts else cin
    if tile_m is None:
        tile_m = _pick_tile_m(m, k, cin, couts)
    num_blocks = -(-m // tile_m)
    m_pad = num_blocks * tile_m

    # bf16 stream + pad M up to a multiple of tile_m (padded rows are dropped after).
    x = feats_mkc.astype(jnp.bfloat16)
    if m_pad != m:
        x = jnp.pad(x, ((0, m_pad - m), (0, 0), (0, 0)))
    # [M_pad, K, Cin] -> [Cin, num_blocks, K, tile_m] -> [Cin, num_blocks*K*tile_m]
    # so that grid block i is the contiguous, lane-dense column range
    # [i*K*tile_m, (i+1)*K*tile_m) holding all K neighbors of tile_m centers.
    x = x.reshape(num_blocks, tile_m, k, cin).transpose(3, 0, 2, 1)
    x = x.reshape(cin, num_blocks * k * tile_m)

    in_specs = [pl.BlockSpec((cin, k * tile_m), lambda i: (0, i))]
    params = []
    for w, b in zip(weights, biases):
        in_specs.append(pl.BlockSpec(w.shape, lambda i: (0, 0)))   # resident constants
        in_specs.append(pl.BlockSpec(b.shape, lambda i: (0, 0)))
        params += [w, b]

    out = pl.pallas_call(
        _make_sa_kernel(len(weights), k, tile_m),
        out_shape=jax.ShapeDtypeStruct((c_last, m_pad), jnp.float32),
        grid_spec=pltpu.PrefetchScalarGridSpec(
            num_scalar_prefetch=0,
            grid=(num_blocks,),
            in_specs=in_specs,
            out_specs=pl.BlockSpec((c_last, tile_m), lambda i: (0, i)),
        ),
        compiler_params=pltpu.CompilerParams(
            dimension_semantics=("parallel",),
            vmem_limit_bytes=vmem_limit_bytes),
    )(x, *params)
    return out[:, :m]                                    # [C_last, M]


# ============================================================================
# Plain-JAX glue: FPS, ball query, batched gathers (data-dependent indexing).
# ============================================================================
def farthest_point_sample(xyz_t, npoint):
    """xyz_t: [B, N, 3] -> [B, npoint] int32 (CUDA pointutils FPS, seeded at index 0)."""
    b, n, _ = xyz_t.shape

    def body(i, state):
        idx, dist, farthest = state
        idx = idx.at[:, i].set(farthest)
        centroid = xyz_t[jnp.arange(b), farthest]               # [B, 3]
        d = jnp.sum((xyz_t - centroid[:, None, :]) ** 2, -1)    # [B, N]
        dist = jnp.minimum(dist, d)
        farthest = jnp.argmax(dist, axis=-1).astype(jnp.int32)
        return idx, dist, farthest

    state = (jnp.zeros((b, npoint), jnp.int32),
             jnp.full((b, n), 1e10, jnp.float32),
             jnp.zeros((b,), jnp.int32))
    idx, _, _ = jax.lax.fori_loop(0, npoint, body, state)
    return idx


def ball_query(radius, nsample, xyz_t, new_xyz_t):
    """xyz_t: [B,N,3], new_xyz_t: [B,S,3] -> [B,S,nsample] int32.
    Matches CUDA ball_query: first nsample in-radius indices (ascending), padded
    with the first in-radius index when fewer than nsample neighbors exist."""
    n = xyz_t.shape[1]
    sqr = jnp.sum((new_xyz_t[:, :, None, :] - xyz_t[:, None, :, :]) ** 2, -1)
    within = sqr <= radius ** 2
    cand = jnp.where(within, jnp.arange(n, dtype=jnp.int32)[None, None, :], n)
    ordered = jnp.sort(cand, axis=-1)[:, :, :nsample]
    first = ordered[:, :, :1]
    return jnp.where(ordered >= n, first, ordered).astype(jnp.int32)


def _batched_gather(feat_t, idx):
    """feat_t: [B, N, C], idx: [B, ...] int -> [B, ..., C]."""
    return jax.vmap(lambda f, i: f[i])(feat_t, idx)


# ============================================================================
# Module
# ============================================================================
class PointNetSetAbstractionRatioPallas:
    """JAX/Pallas port of PointNetSetAbstractionRatio.
    Implements the default configuration: group_all=False, use_xyz=True,
    use_act=True with ReLU, mean_aggr=False, BatchNorm2d applied in eval mode
    with deterministic (synthetic) running stats folded into the conv weight/bias."""

    def __init__(self, ratio, radius, nsample, in_channel, mlp, group_all,
                 return_fps=False, use_xyz=True, key=None):
        # TODO(synk): group_all=True (pointutils.GroupAll), mean_aggr=True and
        #             use_act=False / non-ReLU activation / InstanceNorm variants
        #             are not wired up.
        assert not group_all
        self.ratio = ratio
        self.radius = radius
        self.nsample = nsample
        self.use_xyz = use_xyz
        self.return_fps = return_fps

        if key is None:
            key = jax.random.PRNGKey(42)
        last = in_channel + 3 if use_xyz else in_channel
        eps = 1e-5
        self.weights, self.biases = [], []
        for out_c in mlp:
            key, kw, kg, kb = jax.random.split(key, 4)
            bound = 1.0 / math.sqrt(last)          # Conv2d default uniform fan-in bound
            w = jax.random.uniform(kw, (out_c, last), jnp.float32, -bound, bound)
            gamma = jax.random.uniform(kg, (out_c,), jnp.float32, 0.5, 1.5)
            beta = jax.random.uniform(kb, (out_c,), jnp.float32, -0.1, 0.1)
            running_mean = jnp.zeros((out_c,), jnp.float32)
            running_var = jnp.ones((out_c,), jnp.float32)
            scale = gamma / jnp.sqrt(running_var + eps)
            bias = beta - running_mean * scale
            # Fold BN scale into the conv weight; keep bias separate (f32).
            self.weights.append((w * scale[:, None]).astype(jnp.bfloat16))   # [Cout, Cin]
            self.biases.append(bias[:, None].astype(jnp.float32))            # [Cout, 1]
            last = out_c

    def __call__(self, xyz, points, fps_idx=None):
        # xyz: [B, 3, N], points: [B, D, N]   (same axis convention as torch module)
        b, _, n = xyz.shape
        npoint = int(n * self.ratio)
        xyz_t = jnp.transpose(xyz, (0, 2, 1))                          # [B, N, 3]

        if fps_idx is None:
            fps_idx = farthest_point_sample(xyz_t, npoint)             # [B, S]
        new_xyz_t = _batched_gather(xyz_t, fps_idx)                    # [B, S, 3]
        new_xyz = jnp.transpose(new_xyz_t, (0, 2, 1))                  # [B, 3, S]

        # QueryAndGroup(radius, nsample, use_xyz=True)
        idx = ball_query(self.radius, self.nsample, xyz_t, new_xyz_t)  # [B, S, K]
        grouped_xyz = _batched_gather(xyz_t, idx) - new_xyz_t[:, :, None, :]   # [B,S,K,3]
        points_t = jnp.transpose(points, (0, 2, 1))                    # [B, N, D]
        grouped_pts = _batched_gather(points_t, idx)                   # [B, S, K, D]
        feats = jnp.concatenate([grouped_xyz, grouped_pts], -1)        # [B, S, K, 3+D]

        s, k = npoint, self.nsample
        cin = feats.shape[-1]
        feats_mkc = feats.reshape(b * s, k, cin)                       # [M, K, Cin]

        pooled = sa_mlp_maxpool(feats_mkc, self.weights, self.biases)  # [C_last, M]
        new_points = pooled.reshape(-1, b, s).transpose(1, 0, 2)       # [B, C_last, S]

        if self.return_fps:
            return new_xyz, new_points, fps_idx
        return new_xyz, new_points


if __name__ == "__main__":
    key = jax.random.PRNGKey(0)
    k_xyz, k_pts, k_mod = jax.random.split(key, 3)

    B, D, N = 2, 4, 16                     # batch, feature channels, points
    xyz = jax.random.uniform(k_xyz, (B, 3, N), jnp.float32)      # [B, 3, N]
    points = jax.random.normal(k_pts, (B, D, N), jnp.float32)    # [B, D, N]

    module = PointNetSetAbstractionRatioPallas(
        ratio=0.5, radius=0.8, nsample=8, in_channel=D, mlp=[16, 32],
        group_all=False, key=k_mod)

    new_xyz, new_points = module(xyz, points)
    jax.block_until_ready((new_xyz, new_points))

    assert new_xyz.shape == (B, 3, N // 2)
    assert new_points.shape == (B, 32, N // 2)
    assert bool(jnp.all(jnp.isfinite(new_points)))
    print("KERNEL_OK")
</pallas_src>

<mosaic_0001>
module attributes {stable_mosaic.version = 11 : i64} {
  func.func @kernel(%arg0: i32, %arg1: memref<7x1024xbf16, #tpu.memory_space<vmem>>, %arg2: memref<16x7xbf16, #tpu.memory_space<vmem>>, %arg3: memref<16x1xf32, #tpu.memory_space<vmem>>, %arg4: memref<32x16xbf16, #tpu.memory_space<vmem>>, %arg5: memref<32x1xf32, #tpu.memory_space<vmem>>, %arg6: memref<32x128xf32, #tpu.memory_space<vmem>>) attributes {dimension_semantics = [#tpu.dimension_semantics<parallel>], iteration_bounds = array<i64: 1>, scalar_prefetch = 0 : i64, scratch_operands = 0 : i64, tpu.core_type = #tpu.core_type<tc>, window_params = [{transform_indices = @transform_0, window_bounds = array<i64: 7, 1024>}, {pipeline_mode = #tpu.pipeline_mode<synchronous>, transform_indices = @transform_1, window_bounds = array<i64: 16, 7>}, {pipeline_mode = #tpu.pipeline_mode<synchronous>, transform_indices = @transform_2, window_bounds = array<i64: 16, 1>}, {pipeline_mode = #tpu.pipeline_mode<synchronous>, transform_indices = @transform_3, window_bounds = array<i64: 32, 16>}, {pipeline_mode = #tpu.pipeline_mode<synchronous>, transform_indices = @transform_4, window_bounds = array<i64: 32, 1>}, {transform_indices = @transform_5, window_bounds = array<i64: 32, 128>}]} {
    %c0 = arith.constant 0 : index
    %c0_0 = arith.constant 0 : index
    %0 = vector.load %arg1[%c0, %c0_0] : memref<7x1024xbf16, #tpu.memory_space<vmem>>, vector<7x1024xbf16>
    %c0_1 = arith.constant 0 : index
    %c0_2 = arith.constant 0 : index
    %1 = vector.load %arg2[%c0_1, %c0_2] : memref<16x7xbf16, #tpu.memory_space<vmem>>, vector<16x7xbf16>
    %c0_3 = arith.constant 0 : index
    %c0_4 = arith.constant 0 : index
    %2 = vector.load %arg3[%c0_3, %c0_4] : memref<16x1xf32, #tpu.memory_space<vmem>>, vector<16x1xf32>
    %cst = arith.constant dense<0.000000e+00> : vector<16x1024xf32>
    %3 = tpu.matmul %1, %0, %cst {dimension_numbers = #tpu.dot_dimension_numbers<[1], [0], [0], [1], [0, 0, 1, 1], [], []>} : vector<16x7xbf16>, vector<7x1024xbf16>, vector<16x1024xf32> -> vector<16x1024xf32>
    %4 = vector.broadcast %2 : vector<16x1xf32> to vector<16x1024xf32>
    %5 = arith.addf %3, %4 : vector<16x1024xf32>
    %cst_5 = arith.constant 0.000000e+00 : f32
    %6 = vector.broadcast %cst_5 : f32 to vector<16x1024xf32>
    %7 = arith.maximumf %5, %6 : vector<16x1024xf32>
    %8 = arith.truncf %7 : vector<16x1024xf32> to vector<16x1024xbf16>
    %c0_6 = arith.constant 0 : index
    %c0_7 = arith.constant 0 : index
    %9 = vector.load %arg4[%c0_6, %c0_7] : memref<32x16xbf16, #tpu.memory_space<vmem>>, vector<32x16xbf16>
    %c0_8 = arith.constant 0 : index
    %c0_9 = arith.constant 0 : index
    %10 = vector.load %arg5[%c0_8, %c0_9] : memref<32x1xf32, #tpu.memory_space<vmem>>, vector<32x1xf32>
    %cst_10 = arith.constant dense<0.000000e+00> : vector<32x1024xf32>
    %11 = tpu.matmul %9, %8, %cst_10 {dimension_numbers = #tpu.dot_dimension_numbers<[1], [0], [0], [1], [0, 0, 1, 1], [], []>} : vector<32x16xbf16>, vector<16x1024xbf16>, vector<32x1024xf32> -> vector<32x1024xf32>
    %12 = vector.broadcast %10 : vector<32x1xf32> to vector<32x1024xf32>
    %13 = arith.addf %11, %12 : vector<32x1024xf32>
    %cst_11 = arith.constant 0.000000e+00 : f32
    %14 = vector.broadcast %cst_11 : f32 to vector<32x1024xf32>
    %15 = arith.maximumf %13, %14 : vector<32x1024xf32>
    %16 = vector.extract_strided_slice %15 {offsets = [0, 0], sizes = [32, 128], strides = [1, 1]} : vector<32x1024xf32> to vector<32x128xf32>
    %17 = vector.extract_strided_slice %15 {offsets = [0, 128], sizes = [32, 128], strides = [1, 1]} : vector<32x1024xf32> to vector<32x128xf32>
    %18 = arith.maximumf %16, %17 : vector<32x128xf32>
    %19 = vector.extract_strided_slice %15 {offsets = [0, 256], sizes = [32, 128], strides = [1, 1]} : vector<32x1024xf32> to vector<32x128xf32>
    %20 = arith.maximumf %18, %19 : vector<32x128xf32>
    %21 = vector.extract_strided_slice %15 {offsets = [0, 384], sizes = [32, 128], strides = [1, 1]} : vector<32x1024xf32> to vector<32x128xf32>
    %22 = arith.maximumf %20, %21 : vector<32x128xf32>
    %23 = vector.extract_strided_slice %15 {offsets = [0, 512], sizes = [32, 128], strides = [1, 1]} : vector<32x1024xf32> to vector<32x128xf32>
    %24 = arith.maximumf %22, %23 : vector<32x128xf32>
    %25 = vector.extract_strided_slice %15 {offsets = [0, 640], sizes = [32, 128], strides = [1, 1]} : vector<32x1024xf32> to vector<32x128xf32>
    %26 = arith.maximumf %24, %25 : vector<32x128xf32>
    %27 = vector.extract_strided_slice %15 {offsets = [0, 768], sizes = [32, 128], strides = [1, 1]} : vector<32x1024xf32> to vector<32x128xf32>
    %28 = arith.maximumf %26, %27 : vector<32x128xf32>
    %29 = vector.extract_strided_slice %15 {offsets = [0, 896], sizes = [32, 128], strides = [1, 1]} : vector<32x1024xf32> to vector<32x128xf32>
    %30 = arith.maximumf %28, %29 : vector<32x128xf32>
    %c0_12 = arith.constant 0 : index
    %c0_13 = arith.constant 0 : index
    %31 = vector.load %arg6[%c0_12, %c0_13] : memref<32x128xf32, #tpu.memory_space<vmem>>, vector<32x128xf32>
    tpu.vector_store %arg6[%c0_12, %c0_13], %30 {strides = array<i32>} : memref<32x128xf32, #tpu.memory_space<vmem>>, vector<32x128xf32>,
    return
  }
  func.func @transform_0(%arg0: i32) -> (i32, i32) {
    %c0_i32 = arith.constant 0 : i32
    %c0_i32_0 = arith.constant 0 : i32
    return %c0_i32, %arg0 : i32, i32
  }
  func.func @transform_1(%arg0: i32) -> (i32, i32) {
    %c0_i32 = arith.constant 0 : i32
    %c0_i32_0 = arith.constant 0 : i32
    %c0_i32_1 = arith.constant 0 : i32
    return %c0_i32, %c0_i32_0 : i32, i32
  }
  func.func @transform_2(%arg0: i32) -> (i32, i32) {
    %c0_i32 = arith.constant 0 : i32
    %c0_i32_0 = arith.constant 0 : i32
    %c0_i32_1 = arith.constant 0 : i32
    return %c0_i32, %c0_i32_0 : i32, i32
  }
  func.func @transform_3(%arg0: i32) -> (i32, i32) {
    %c0_i32 = arith.constant 0 : i32
    %c0_i32_0 = arith.constant 0 : i32
    %c0_i32_1 = arith.constant 0 : i32
    return %c0_i32, %c0_i32_0 : i32, i32
  }
  func.func @transform_4(%arg0: i32) -> (i32, i32) {
    %c0_i32 = arith.constant 0 : i32
    %c0_i32_0 = arith.constant 0 : i32
    %c0_i32_1 = arith.constant 0 : i32
    return %c0_i32, %c0_i32_0 : i32, i32
  }
  func.func @transform_5(%arg0: i32) -> (i32, i32) {
    %c0_i32 = arith.constant 0 : i32
    %c0_i32_0 = arith.constant 0 : i32
    return %c0_i32, %arg0 : i32, i32
  }
}

</mosaic_0001>

<bundles_post_ra>
// kernel: tpu_custom_call.1
= control target key start
LH: loop header
LB: loop body
LE: loop exit
PB: predicated region body
PF: predicated region fallthrough
CT: control target
= control target key end

     0   :  { %vm69_vm0 = vcmask 1042432   ;;  %vm70_vm1 = vcmask 1043456   ;;  %v695_v3 = vmov 65535   ;;  %v696_v7 = vmov 0   ;;  %s847_s0 = inlined_call_operand.vmem [shape: bf16[7,1024], index: 0, kind: input, shape index: {}]   ;;  %s848_s1 = inlined_call_operand.vmem [shape: bf16[16,7], index: 1, kind: input, shape index: {}]   ;;  %s849_s2 = inlined_call_operand.vmem [shape: f32[16,1], index: 2, kind: input, shape index: {}]   ;;  %s850_s3 = inlined_call_operand.vmem [shape: bf16[32,16], index: 3, kind: input, shape index: {}]   ;;  %s851_s4 = inlined_call_operand.vmem [shape: f32[32,1], index: 4, kind: input, shape index: {}]   ;;  %s852_s5 = inlined_call_operand.hbm [shape: f32[32,128], index: 5, kind: output, shape index: {}]  }
   0x1   :  { %v22_v0 = vld [vmem:[%s847_s0] sm:$0xff]  ;;  %v23_v1 = vld [vmem:[%s847_s0 + $0x8] sm:$0xff]  ;;  %v71_v4 = vsel %vm69_vm0, 4294967295, %v695_v3  ;;  %129 = vmatprep.mubr.bf16.mxu0 %v696_v7  ;;  %172 = vmatprep.mubr.bf16.mxu1 %v696_v7  ;;  %v24_v10 = vld [vmem:[%s847_s0 + $0x10] sm:$0xff] }
   0x2   :  { %v632_v2 = vcombine.high %v22_v0, %v22_v0  ;;  %v634_v5 = vcombine.high %v23_v1, %v23_v1  ;;  %v631_v6 = vcombine.low %v22_v0, %v22_v0  ;;  %v72_v8 = vsel %vm70_vm1, %v71_v4, 0  ;;  %v25_v11 = vld [vmem:[%s847_s0 + $0x18] sm:$0xff]  ;;  %658 = vset.pattern.permute.xlu0 %v696_v7  ;;  %v28_v12 = vld [vmem:[%s849_s2] sm:$0xff]  ;;  %659 = vset.pattern.permute.xlu1 %v696_v7  ;;  %v29_v17 = vld [vmem:[%s849_s2 + $0x8] sm:$0xff] }
   0x3   :  { %v633_v9 = vcombine.low %v23_v1, %v23_v1  ;;  %v635_v16 = vcombine.low %v24_v10, %v24_v10  ;;  %32 = vperm.xlu0 %658, %v28_v12   ;;  %v636_v19 = vcombine.high %v24_v10, %v24_v10  ;;  %v637_v20 = vcombine.low %v25_v11, %v25_v11  ;;  %v664_v22 = vld [vmem:[%s848_s1] sm:$0xff]  }
   0x4   :  { %v77_v13 = vand.u32 %v632_v2, %v72_v8  ;;  %v83_v14 = vand.u32 %v634_v5, %v72_v8  ;;  %v74_v15 = vand.u32 %v631_v6, %v72_v8  ;;  %v638_v21 = vcombine.high %v25_v11, %v25_v11 }
   0x5   :  { %v80_v18 = vand.u32 %v633_v9, %v72_v8  ;;  %v86_v23 = vand.u32 %v635_v16, %v72_v8 }
   0x6   :  { %97 = vmatprep.subr.bf16.mxu0 %v77_v13  ;;  %140 = vmatprep.subr.bf16.mxu1 %v83_v14 }
   0x7   :  { %10 = vsyncpa [#allocation3], 0  ;;  %98 = vmatpush1.bf16.msra.mxu0 %v74_v15  ;;  %141 = vmatpush1.bf16.msra.mxu1 %v80_v18  ;;  %vm65_vm2 = vcmask 56320   ;;  %v89_v24 = vand.u32 %v636_v19, %v72_v8  ;;  %v95_v25 = vand.u32 %v638_v21, %v72_v8  ;;  %v92_v26 = vand.u32 %v637_v20, %v72_v8  ;;  %v299_v27 = vld [vmem:[%s851_s4 + $0x10] sm:$0xff]  ;;  %v297_v28 = vld [vmem:[%s851_s4] sm:$0xff] }
   0x8   :  { %37 = vperm.xlu0 %658, %v29_v17   ;;  %303 = vperm.xlu1 %659, %v297_v28   ;;  %v298_v29 = vld [vmem:[%s851_s4 + $0x8] sm:$0xff]  ;;  %v300_v30 = vld [vmem:[%s851_s4 + $0x18] sm:$0xff]  ;;  %v669_v8 = vld [vmem:[%s850_s3] sm:$0xff]   ;;  %vm331_vm3 = vcmask 130048  }
   0x9   :  { %183 = vmatprep.subr.bf16.mxu0 %v89_v24  ;;  %226 = vmatprep.subr.bf16.mxu1 %v95_v25 }
   0xa   :  { %639 = vmatmul.mubr.msk.bf16.vlgmr.msra.gmra.mrb[0].mxu0 %vm65_vm2, %v664_v22  ;;  %640 = vmatmul.mubr.msk.bf16.vlgmr.msra.gmra.mrb[0].mxu1 %vm65_vm2, %v664_v22 }
   0xb   :  { %184 = vmatpush1.bf16.msra.mxu0 %v86_v23  ;;  %227 = vmatpush1.bf16.msra.mxu1 %v92_v26 }
   0xc   :  { %215 = vmatprep.mubr.bf16.mxu0 %v696_v7  ;;  %258 = vmatprep.mubr.bf16.mxu1 %v696_v7 }
   0xd   :  { %313 = vperm.xlu0 %658, %v299_v27   ;;  %308 = vperm.xlu1 %659, %v298_v29   ;;  %v670_v27 = vld [vmem:[%s850_s3 + $0x8] sm:$0xff]   ;;  %s697_s3 = smov [#allocation2]  }
   0xe   :  { %s619_s15 = sshll.u32 %s697_s3, 4  ;;  %s620_s15 = int_to_ptr.vmem [resolvable:$true] %s619_s15 }
   0xf   :  { %s671_s16 = scalar_lea.vmem %s620_s15, 512  ;;  %p676_p1 = scmp.lt.s32.totalorder %s620_s15, %s620_s15 }
  0x10   :  { %p672_p0 = scmp.ne.s32.totalorder %s620_s15, %s671_s16  ;;  %p677_p2 = scmp.lt.s32.totalorder %s671_s16, %s671_s16 }
  0x11   :  { %318 = vperm.xlu1 %659, %v300_v30  }
  0x12   :  { %641 = vmatmul.mubr.msk.bf16.vlgmr.msra.gmra.mrb[4].mxu0 %vm65_vm2, %v664_v22  ;;  %642 = vmatmul.mubr.msk.bf16.vlgmr.msra.gmra.mrb[4].mxu1 %vm65_vm2, %v664_v22  ;;  %p678_p3 = por %p677_p2, %p676_p1 }
  0x13   :  { %370 = vmatprep.mubr.bf16.mxu0 %v696_v7  ;;  %423 = vmatprep.mubr.bf16.mxu1 %v696_v7 }
  0x14   :  { %p679_p4 = pnand %p678_p3, %p672_p0 }
  0x82   :  { %v33_v31 = vpop.permute.xlu0 %32 }
  0x87   :  { %v38_v32 = vpop.permute.xlu0 %37  ;;  %v795_v28 = vpop.permute.xlu1 %303 }
  0x8c   :  { %v797_v29 = vpop.permute.xlu1 %308 }
  0xdd   :  { %v131_v33 = vpop.f32.mrb[0].mxu0  ;;  %v174_v34 = vpop.f32.mrb[0].mxu1 }
  0xde   :  { %v132_v35 = vadd.f32 %v131_v33, %v33_v31  ;;  %v175_v36 = vadd.f32 %v174_v34, %v33_v31  ;;  %v133_v37 = vpop.f32.mrb[1].mxu0  ;;  %v176_v38 = vpop.f32.mrb[1].mxu1 }
  0xdf   :  { %v134_v39 = vadd.f32 %v133_v37, %v33_v31  ;;  %v177_v40 = vadd.f32 %v176_v38, %v33_v31  ;;  %v135_v41 = vpop.f32.mrb[2].mxu0  ;;  %v178_v42 = vpop.f32.mrb[2].mxu1 }
  0xe0   :  { %v136_v43 = vadd.f32 %v135_v41, %v38_v32  ;;  %v179_v44 = vadd.f32 %v178_v42, %v38_v32  ;;  %v137_v45 = vpop.f32.mrb[3].mxu0  ;;  %v180_v46 = vpop.f32.mrb[3].mxu1  ;;  %v269_v49 = vmax.f32 %v132_v35, 0.0  ;;  %v271_v50 = vmax.f32 %v175_v36, 0.0 }
  0xe1   :  { %v138_v47 = vadd.f32 %v137_v45, %v38_v32  ;;  %v181_v48 = vadd.f32 %v180_v46, %v38_v32  ;;  %v270_v53 = vmax.f32 %v134_v39, 0.0  ;;  %v272_v54 = vmax.f32 %v177_v40, 0.0 }
  0xe2   :  { %v277_v51 = vmax.f32 %v136_v43, 0.0  ;;  %v279_v52 = vmax.f32 %v179_v44, 0.0 }
  0xe3   :  { %v278_v55 = vmax.f32 %v138_v47, 0.0  ;;  %v280_v56 = vmax.f32 %v181_v48, 0.0 }
  0xe4   :  { %v285_v57 = vpack.c.bf16 %v277_v51, %v269_v49  ;;  %v287_v58 = vpack.c.bf16 %v279_v52, %v271_v50 }
  0xe5   :  { %v286_v59 = vpack.c.bf16 %v278_v55, %v270_v53  ;;  %v288_v60 = vpack.c.bf16 %v280_v56, %v272_v54  ;;  %v217_v61 = vpop.f32.mrb[4].mxu0  ;;  %v260_v62 = vpop.f32.mrb[4].mxu1 }
  0xe6   :  { %v218_v63 = vadd.f32 %v217_v61, %v33_v31  ;;  %v261_v0 = vadd.f32 %v260_v62, %v33_v31  ;;  %v219_v1 = vpop.f32.mrb[5].mxu0  ;;  %v262_v2 = vpop.f32.mrb[5].mxu1 }
  0xe7   :  { %v220_v3 = vadd.f32 %v219_v1, %v33_v31  ;;  %v263_v4 = vadd.f32 %v262_v2, %v33_v31  ;;  %v221_v5 = vpop.f32.mrb[6].mxu0  ;;  %v264_v6 = vpop.f32.mrb[6].mxu1  ;;  %338 = vmatprep.subr.bf16.mxu0 %v286_v59  ;;  %391 = vmatprep.subr.bf16.mxu1 %v288_v60 }
  0xe8   :  { %v222_v9 = vadd.f32 %v221_v5, %v38_v32  ;;  %v265_v10 = vadd.f32 %v264_v6, %v38_v32  ;;  %v223_v11 = vpop.f32.mrb[7].mxu0  ;;  %v266_v12 = vpop.f32.mrb[7].mxu1  ;;  %339 = vmatpush1.bf16.msra.mxu0 %v285_v57  ;;  %392 = vmatpush1.bf16.msra.mxu1 %v287_v58  ;;  %v273_v15 = vmax.f32 %v218_v63, 0.0  ;;  %v275_v16 = vmax.f32 %v261_v0, 0.0 }
  0xe9   :  { %v224_v13 = vadd.f32 %v223_v11, %v38_v32  ;;  %v267_v14 = vadd.f32 %v266_v12, %v38_v32  ;;  %v274_v19 = vmax.f32 %v220_v3, 0.0  ;;  %v276_v20 = vmax.f32 %v263_v4, 0.0  ;;  %v807_v53 = vpop.permute.xlu0 %313  ;;  %v809_v54 = vpop.permute.xlu1 %318 }
  0xea   :  { %v281_v17 = vmax.f32 %v222_v9, 0.0  ;;  %v283_v18 = vmax.f32 %v265_v10, 0.0 }
  0xeb   :  { %v282_v21 = vmax.f32 %v224_v13, 0.0  ;;  %v284_v22 = vmax.f32 %v267_v14, 0.0  ;;  %645 = vmatmul.mubr.msk.bf16.vlgmr.msra.gmra.mrb[8].mxu0 %vm331_vm3, %v669_v8  ;;  %647 = vmatmul.mubr.msk.bf16.vlgmr.msra.gmra.mrb[8].mxu1 %vm331_vm3, %v669_v8 }
  0xec   :  { %v289_v23 = vpack.c.bf16 %v281_v17, %v273_v15  ;;  %v291_v24 = vpack.c.bf16 %v283_v18, %v275_v16  ;;  %380 = vmatprep.mubr.bf16.mxu0 %v696_v7  ;;  %433 = vmatprep.mubr.bf16.mxu1 %v696_v7 }
  0xed   :  { %v290_v25 = vpack.c.bf16 %v282_v21, %v274_v19  ;;  %v292_v26 = vpack.c.bf16 %v284_v22, %v276_v20 }
  0xef   :  { %444 = vmatprep.subr.bf16.mxu0 %v290_v25  ;;  %497 = vmatprep.subr.bf16.mxu1 %v292_v26 }
  0xf0   :  { %445 = vmatpush1.bf16.msra.mxu0 %v289_v23  ;;  %498 = vmatpush1.bf16.msra.mxu1 %v291_v24 }
  0xf3   :  { %646 = vmatmul.mubr.msk.bf16.gmra.mrb[12].mxu0 %vm331_vm3, %v670_v27  ;;  %648 = vmatmul.mubr.msk.bf16.gmra.mrb[12].mxu1 %vm331_vm3, %v670_v27 }
  0xf4   :  { %476 = vmatprep.mubr.bf16.mxu0 %v696_v7  ;;  %529 = vmatprep.mubr.bf16.mxu1 %v696_v7 }
  0xfb   :  { %649 = vmatmul.mubr.msk.bf16.vlgmr.msra.gmra.mrb[16].mxu0 %vm331_vm3, %v669_v8  ;;  %651 = vmatmul.mubr.msk.bf16.vlgmr.msra.gmra.mrb[16].mxu1 %vm331_vm3, %v669_v8 }
  0xfc   :  { %486 = vmatprep.mubr.bf16.mxu0 %v696_v7  ;;  %539 = vmatprep.mubr.bf16.mxu1 %v696_v7 }
 0x103   :  { %650 = vmatmul.mubr.msk.bf16.gmra.mrb[20].mxu0 %vm331_vm3, %v670_v27  ;;  %652 = vmatmul.mubr.msk.bf16.gmra.mrb[20].mxu1 %vm331_vm3, %v670_v27 }
 0x1be   :  { %v372_v30 = vpop.f32.mrb[8].mxu0  ;;  %v425_v31 = vpop.f32.mrb[8].mxu1 }
 0x1bf   :  { %v373_v32 = vadd.f32 %v372_v30, %v795_v28  ;;  %v374_v33 = vpop.f32.mrb[9].mxu0  ;;  %v426_v34 = vadd.f32 %v425_v31, %v795_v28  ;;  %v427_v35 = vpop.f32.mrb[9].mxu1 }
 0x1c0   :  { %v375_v36 = vadd.f32 %v374_v33, %v795_v28  ;;  %v376_v37 = vpop.f32.mrb[10].mxu0  ;;  %v428_v7 = vadd.f32 %v427_v35, %v795_v28  ;;  %v429_v38 = vpop.f32.mrb[10].mxu1 }
 0x1c1   :  { %v550_v39 = vmax.f32 %v373_v32, 0.0  ;;  %v377_v40 = vadd.f32 %v376_v37, %v797_v29  ;;  %v378_v41 = vpop.f32.mrb[11].mxu0  ;;  %v430_v42 = vadd.f32 %v429_v38, %v797_v29  ;;  %v431_v43 = vpop.f32.mrb[11].mxu1  ;;  %v552_v45 = vmax.f32 %v426_v34, 0.0 }
 0x1c2   :  { %v551_v44 = vmax.f32 %v375_v36, 0.0  ;;  %v379_v46 = vadd.f32 %v378_v41, %v797_v29  ;;  %v553_v48 = vmax.f32 %v428_v7, 0.0  ;;  %v432_v52 = vadd.f32 %v431_v43, %v797_v29 }
 0x1c3   :  { %v558_v47 = vmax.f32 %v377_v40, 0.0  ;;  %v560_v51 = vmax.f32 %v430_v42, 0.0 }
 0x1c4   :  { %v582_v49 = vmax.f32 %v550_v39, %v551_v44  ;;  %v559_v50 = vmax.f32 %v379_v46, 0.0  ;;  %v561_v1 = vmax.f32 %v432_v52, 0.0 }
 0x1c6   :  { %v586_v55 = vmax.f32 %v582_v49, %v552_v45  ;;  %v583_v56 = vmax.f32 %v558_v47, %v559_v50  ;;  %v382_v57 = vpop.f32.mrb[12].mxu0  ;;  %v435_v58 = vpop.f32.mrb[12].mxu1 }
 0x1c7   :  { %v383_v59 = vadd.f32 %v382_v57, %v807_v53  ;;  %v436_v60 = vadd.f32 %v435_v58, %v807_v53  ;;  %v384_v61 = vpop.f32.mrb[13].mxu0  ;;  %v437_v62 = vpop.f32.mrb[13].mxu1 }
 0x1c8   :  { %v590_v63 = vmax.f32 %v586_v55, %v553_v48  ;;  %v587_v0 = vmax.f32 %v583_v56, %v560_v51  ;;  %v385_v2 = vadd.f32 %v384_v61, %v807_v53  ;;  %v386_v3 = vpop.f32.mrb[14].mxu0  ;;  %v439_v4 = vpop.f32.mrb[14].mxu1  ;;  %v438_v13 = vadd.f32 %v437_v62, %v807_v53 }
 0x1c9   :  { %v566_v5 = vmax.f32 %v383_v59, 0.0  ;;  %v387_v6 = vadd.f32 %v386_v3, %v809_v54  ;;  %v388_v8 = vpop.f32.mrb[15].mxu0  ;;  %v440_v9 = vadd.f32 %v439_v4, %v809_v54  ;;  %v441_v10 = vpop.f32.mrb[15].mxu1  ;;  %v568_v15 = vmax.f32 %v436_v60, 0.0 }
 0x1ca   :  { %v591_v11 = vmax.f32 %v587_v0, %v561_v1  ;;  %v567_v12 = vmax.f32 %v385_v2, 0.0  ;;  %v389_v14 = vadd.f32 %v388_v8, %v809_v54  ;;  %v442_v20 = vadd.f32 %v441_v10, %v809_v54 }
 0x1cb   :  { %v574_v16 = vmax.f32 %v387_v6, 0.0  ;;  %v576_v19 = vmax.f32 %v440_v9, 0.0  ;;  %v569_v21 = vmax.f32 %v438_v13, 0.0 }
 0x1cc   :  { %v584_v17 = vmax.f32 %v566_v5, %v567_v12  ;;  %v575_v18 = vmax.f32 %v389_v14, 0.0  ;;  %v577_v33 = vmax.f32 %v442_v20, 0.0 }
 0x1ce   :  { %v588_v22 = vmax.f32 %v584_v17, %v568_v15  ;;  %v585_v23 = vmax.f32 %v574_v16, %v575_v18  ;;  %v478_v24 = vpop.f32.mrb[16].mxu0  ;;  %v531_v25 = vpop.f32.mrb[16].mxu1 }
 0x1cf   :  { %v479_v26 = vadd.f32 %v478_v24, %v795_v28  ;;  %v480_v27 = vpop.f32.mrb[17].mxu0  ;;  %v533_v30 = vpop.f32.mrb[17].mxu1  ;;  %v532_v7 = vadd.f32 %v531_v25, %v795_v28 }
 0x1d0   :  { %v592_v31 = vmax.f32 %v588_v22, %v569_v21  ;;  %v589_v32 = vmax.f32 %v585_v23, %v576_v19  ;;  %v481_v34 = vadd.f32 %v480_v27, %v795_v28  ;;  %v482_v35 = vpop.f32.mrb[18].mxu0  ;;  %v535_v36 = vpop.f32.mrb[18].mxu1  ;;  %v534_v43 = vadd.f32 %v533_v30, %v795_v28 }
 0x1d1   :  { %v554_v37 = vmax.f32 %v479_v26, 0.0  ;;  %v483_v38 = vadd.f32 %v482_v35, %v797_v29  ;;  %v484_v39 = vpop.f32.mrb[19].mxu0  ;;  %v537_v40 = vpop.f32.mrb[19].mxu1  ;;  %v536_v47 = vadd.f32 %v535_v36, %v797_v29  ;;  %v556_v50 = vmax.f32 %v532_v7, 0.0 }
 0x1d2   :  { %v593_v41 = vmax.f32 %v589_v32, %v577_v33  ;;  %v555_v42 = vmax.f32 %v481_v34, 0.0  ;;  %v485_v44 = vadd.f32 %v484_v39, %v797_v29  ;;  %v538_v49 = vadd.f32 %v537_v40, %v797_v29 }
 0x1d3   :  { %v594_v45 = vmax.f32 %v590_v63, %v554_v37  ;;  %v562_v46 = vmax.f32 %v483_v38, 0.0  ;;  %v557_v55 = vmax.f32 %v534_v43, 0.0  ;;  %v564_v59 = vmax.f32 %v536_v47, 0.0 }
 0x1d4   :  { %v563_v48 = vmax.f32 %v485_v44, 0.0  ;;  %v565_v63 = vmax.f32 %v538_v49, 0.0 }
 0x1d5   :  { %v598_v51 = vmax.f32 %v594_v45, %v555_v42  ;;  %v595_v52 = vmax.f32 %v591_v11, %v562_v46 }
 0x1d6   :  { %v488_v56 = vpop.f32.mrb[20].mxu0  ;;  %v541_v57 = vpop.f32.mrb[20].mxu1 }
 0x1d7   :  { %v602_v58 = vmax.f32 %v598_v51, %v556_v50  ;;  %v599_v60 = vmax.f32 %v595_v52, %v563_v48  ;;  %v489_v28 = vadd.f32 %v488_v56, %v807_v53  ;;  %v490_v61 = vpop.f32.mrb[21].mxu0  ;;  %v543_v62 = vpop.f32.mrb[21].mxu1  ;;  %v542_v5 = vadd.f32 %v541_v57, %v807_v53 }
 0x1d8   :  { %v491_v0 = vadd.f32 %v490_v61, %v807_v53  ;;  %v492_v1 = vpop.f32.mrb[22].mxu0  ;;  %v545_v2 = vpop.f32.mrb[22].mxu1  ;;  %v544_v13 = vadd.f32 %v543_v62, %v807_v53 }
 0x1d9   :  { %v606_v3 = vmax.f32 %v602_v58, %v557_v55  ;;  %v603_v29 = vmax.f32 %v599_v60, %v564_v59  ;;  %v570_v4 = vmax.f32 %v489_v28, 0.0  ;;  %v494_v6 = vpop.f32.mrb[23].mxu0  ;;  %v547_v8 = vpop.f32.mrb[23].mxu1  ;;  %v493_v10 = vadd.f32 %v492_v1, %v809_v54 }
 0x1da   :  { %v571_v9 = vmax.f32 %v491_v0, 0.0  ;;  %v495_v14 = vadd.f32 %v494_v6, %v809_v54  ;;  %v546_v16 = vadd.f32 %v545_v2, %v809_v54  ;;  %v572_v17 = vmax.f32 %v542_v5, 0.0 }
 0x1db   :  { %610 = vst [vmem:[#allocation2] sm:$0xff] %v606_v3  ;;  %v607_v11 = vmax.f32 %v603_v29, %v565_v63  ;;  %v596_v12 = vmax.f32 %v592_v31, %v570_v4  ;;  %v578_v15 = vmax.f32 %v493_v10, 0.0  ;;  %v548_v21 = vadd.f32 %v547_v8, %v809_v54 }
 0x1dc   :  { %v579_v19 = vmax.f32 %v495_v14, 0.0  ;;  %v573_v22 = vmax.f32 %v544_v13, 0.0  ;;  %v580_v24 = vmax.f32 %v546_v16, 0.0 }
 0x1dd   :  { %611 = vst [vmem:[#allocation2 + $0x8] sm:$0xff] %v607_v11  ;;  %v600_v18 = vmax.f32 %v596_v12, %v571_v9  ;;  %v597_v20 = vmax.f32 %v593_v41, %v578_v15  ;;  %v581_v53 = vmax.f32 %v548_v21, 0.0 }
 0x1df   :  { %v604_v23 = vmax.f32 %v600_v18, %v572_v17  ;;  %v601_v25 = vmax.f32 %v597_v20, %v579_v19 }
 0x1e1   :  { %v608_v26 = vmax.f32 %v604_v23, %v573_v22  ;;  %v605_v27 = vmax.f32 %v601_v25, %v580_v24 }
 0x1e3   :  { %612 = vst [vmem:[#allocation2 + $0x10] sm:$0xff] %v608_v26  ;;  %v609_v30 = vmax.f32 %v605_v27, %v581_v53 }
 0x1e5   :  { %613 = vst [vmem:[#allocation2 + $0x18] sm:$0xff] %v609_v30 }
 0x1e6   :  { %682 = shalt.err (!%p679_p4)
}
 0x1e7   :  { %s683_s19 = scalar_lea.hbm %s852_s5, 512 }
 0x1e8   :  { %p684_p5 = scmp.ne.s32.totalorder %s852_s5, %s683_s19  ;;  %p687_p6 = scmp.lt.u32.totalorder %s683_s19, %s852_s5 }
 0x1ea   :  { %p689_p7 = pnand %p687_p6, %p684_p5 }
 0x1ec   :  { %692 = shalt.err (!%p689_p7)
}
 0x1ed   :  { %s698_s24 = smov 128   ;;  %s699_s25 = smov 8  }
 0x1ee   :  { %625 = dma.vmem_to_hbm [thread:$0]  %s620_s15, 512, %s852_s5, [#allocation3], %s698_s24, %s698_s24, %s699_s25  }
 0x1ef   :  { %693 = dma.done.wait [#allocation3], 512  }
 0x1f0   :  { %694 = vsyncadd [#allocation3], 4294966784 }
 0x1f1   :  { %629 = vsyncpa [#allocation3], 1 }

</bundles_post_ra>
